<compile_context>
chip_gen: v5e
topology: v5e:2x2
jax: 0.10.0
libtpu: 0.0.40
codegen_flags: <defaults>
</compile_context>

<pallas_src>
import numpy as np
import jax
import jax.numpy as jnp
from jax.experimental import pallas as pl
from jax.experimental.pallas import tpu as pltpu


def _round_up(a, m):
    return ((a + m - 1) // m) * m


def _pack_factor(num_features, num_targets):
    """Pack P logical rows per physical lane-row.

    Prefer the largest P such that the packed contraction stays small
    (P*F <= 512) and the packed output fits one vreg lane-row (P*T <= 128),
    which makes the final store fully lane-dense.
    """
    for p in (16, 8, 4, 2):
        if p * num_features <= 512 and p * num_targets <= 128:
            return p
    return 1


def dense2_kernel(x_ref, w1_ref, b1_ref, w2_ref, b2_ref, w34_ref, b34_ref,
                  mask_ref, out_ref):
    x = x_ref[...]                                              # (TB, P*F) f32

    h1 = jnp.dot(x, w1_ref[...], preferred_element_type=jnp.float32) + b1_ref[...]
    h1 = jnp.maximum(h1, 0.0)                                   # relu

    h2 = jnp.dot(h1, w2_ref[...], preferred_element_type=jnp.float32) + b2_ref[...]
    h2 = jnp.maximum(h2, 0.0)                                   # relu

    # Fused heads (block-diag): one matmul producing [clamp | softplus] x P.
    z = jnp.dot(h2, w34_ref[...], preferred_element_type=jnp.float32) + b34_ref[...]

    clamped = jnp.maximum(z, -1.0)                              # clamp(min=-1)
    # Softplus with PyTorch default threshold=20 semantics, then + 1e-4.
    softp = jnp.where(z > 20.0, z,
                      jnp.log1p(jnp.exp(jnp.minimum(z, 20.0)))) + 0.0001

    # Grid-invariant head-select mask (1, P*T) of exact {0.0, 1.0}; both
    # branches are finite, so the arithmetic select is exact and only needs
    # the same cheap sublane-broadcast as the bias adds.
    m = mask_ref[...]
    out_ref[...] = clamped * m + softp * (1.0 - m)              # one dense store


def dense2_nn_pallas(x, params, *, block_rows=2048):
    (w1, b1), (w2, b2), (w3, b3), (w4, b4) = params
    assert w3.shape[1] == w4.shape[1], "heads must have equal width"

    B, F = x.shape
    H = w1.shape[1]
    half = w3.shape[1]
    T = 2 * half

    P = _pack_factor(F, T)
    x = x.astype(jnp.float32)

    # ---- packed-row geometry -------------------------------------------------
    rp = max(1, -(-B // P))                       # packed rows needed
    rp = _round_up(rp, 8)                         # sublane multiple
    tb = max(8, _round_up(max(block_rows // P, 1), 8))   # tile cap (packed rows)
    if rp > 8:                                    # keep >=2 grid steps (v7x 2 TCs)
        tb = min(tb, _round_up(-(-rp // 2), 8))
    tb = min(tb, rp)
    rp_pad = _round_up(rp, tb)
    Bp = rp_pad * P                               # padded logical rows

    if Bp != B:
        x = jnp.pad(x, ((0, Bp - B), (0, 0)))
    xp = x.reshape(rp_pad, P * F)                 # P logical rows per lane-row

    # ---- block-diagonal weights (P copies) + fused output heads --------------
    eye = jnp.eye(P, dtype=jnp.float32)
    w34 = jnp.concatenate([w3, w4], axis=1).astype(jnp.float32)   # (H, T)
    b34 = jnp.concatenate([b3, b4], axis=1).astype(jnp.float32)   # (1, T)
    w1p = jnp.kron(eye, w1.astype(jnp.float32))                   # (P*F, P*H)
    w2p = jnp.kron(eye, w2.astype(jnp.float32))                   # (P*H, P*H)
    w34p = jnp.kron(eye, w34)                                     # (P*H, P*T)
    b1p = jnp.tile(b1.astype(jnp.float32), (1, P))                # (1, P*H)
    b2p = jnp.tile(b2.astype(jnp.float32), (1, P))                # (1, P*H)
    b34p = jnp.tile(b34, (1, P))                                  # (1, P*T)

    # Head-select mask: 1.0 -> clamp head, 0.0 -> softplus head (periodic in T).
    col = np.arange(P * T)
    mask = jnp.asarray(((col % T) < half).astype(np.float32)).reshape(1, P * T)

    flops = 2 * Bp * (F * H + H * H + H * T)
    bytes_accessed = 4 * (Bp * (F + T) + P * (F * H + H * H + H * T + 2 * H + T))
    cost = pl.CostEstimate(flops=flops,
                           transcendentals=2 * Bp * half,        # exp + log1p
                           bytes_accessed=bytes_accessed)

    out = pl.pallas_call(
        dense2_kernel,
        out_shape=jax.ShapeDtypeStruct((rp_pad, P * T), jnp.float32),
        grid=(rp_pad // tb,),
        in_specs=[
            pl.BlockSpec((tb, P * F), lambda i: (i, 0)),          # x: streamed
            pl.BlockSpec((P * F, P * H), lambda i: (0, 0)),       # weights: resident
            pl.BlockSpec((1, P * H), lambda i: (0, 0)),
            pl.BlockSpec((P * H, P * H), lambda i: (0, 0)),
            pl.BlockSpec((1, P * H), lambda i: (0, 0)),
            pl.BlockSpec((P * H, P * T), lambda i: (0, 0)),
            pl.BlockSpec((1, P * T), lambda i: (0, 0)),
            pl.BlockSpec((1, P * T), lambda i: (0, 0)),           # head mask
        ],
        out_specs=pl.BlockSpec((tb, P * T), lambda i: (i, 0)),    # lane-dense store
        compiler_params=pltpu.CompilerParams(
            dimension_semantics=("parallel",)),
        cost_estimate=cost,
    )(xp, w1p, b1p, w2p, b2p, w34p, b34p, mask)

    return out.reshape(Bp, T)[:B]


def init_params(key, num_features, num_targets, intermediate_size=10):
    """Deterministic init mirroring nn.Linear shapes; weights stored [in, out]."""
    half = num_targets // 2
    dims = [(num_features, intermediate_size),
            (intermediate_size, intermediate_size),
            (intermediate_size, half),
            (intermediate_size, half)]
    params = []
    for i, (fan_in, fan_out) in enumerate(dims):
        kw, kb = jax.random.split(jax.random.fold_in(key, i))
        bound = 1.0 / jnp.sqrt(fan_in)
        w = jax.random.uniform(kw, (fan_in, fan_out), jnp.float32, -bound, bound)
        b = jax.random.uniform(kb, (1, fan_out), jnp.float32, -bound, bound)
        params.append((w, b))
    return params


def dense2_nn_ref(x, params):
    (w1, b1), (w2, b2), (w3, b3), (w4, b4) = params
    x = x.astype(jnp.float32)
    h = jax.nn.relu(x @ w1 + b1)
    h = jax.nn.relu(h @ w2 + b2)
    out1 = jnp.maximum(h @ w3 + b3, -1.0)
    out2 = jax.nn.softplus(h @ w4 + b4) + 0.0001
    return jnp.concatenate([out1, out2], axis=-1)


if __name__ == "__main__":
    key = jax.random.PRNGKey(0)
    batch, num_features, num_targets = 8, 32, 8

    kx, kp = jax.random.split(key)
    x = jax.random.normal(kx, (batch, num_features), jnp.float32)
    params = init_params(kp, num_features, num_targets, intermediate_size=10)

    out = jax.block_until_ready(dense2_nn_pallas(x, params))
    ref = dense2_nn_ref(x, params)
    assert out.shape == (batch, num_targets)
    assert jnp.allclose(out, ref, atol=1e-4, rtol=1e-4), \
        float(jnp.max(jnp.abs(out - ref)))

    # Non-tile-aligned batch exercises the padding / packing / un-packing path.
    x2 = jax.random.normal(jax.random.fold_in(kx, 1), (13, num_features),
                           jnp.float32)
    out2 = jax.block_until_ready(dense2_nn_pallas(x2, params))
    assert jnp.allclose(out2, dense2_nn_ref(x2, params), atol=1e-4, rtol=1e-4)

    print("KERNEL_OK")
</pallas_src>

<mosaic_0001>
module attributes {stable_mosaic.version = 11 : i64} {
  func.func @dense2_kernel(%arg0: i32, %arg1: memref<8x512xf32, #tpu.memory_space<vmem>>, %arg2: memref<512x160xf32, #tpu.memory_space<vmem>>, %arg3: memref<1x160xf32, #tpu.memory_space<vmem>>, %arg4: memref<160x160xf32, #tpu.memory_space<vmem>>, %arg5: memref<1x160xf32, #tpu.memory_space<vmem>>, %arg6: memref<160x128xf32, #tpu.memory_space<vmem>>, %arg7: memref<1x128xf32, #tpu.memory_space<vmem>>, %arg8: memref<1x128xf32, #tpu.memory_space<vmem>>, %arg9: memref<8x128xf32, #tpu.memory_space<vmem>>) attributes {dimension_semantics = [#tpu.dimension_semantics<parallel>], iteration_bounds = array<i64: 1>, scalar_prefetch = 0 : i64, scratch_operands = 0 : i64, tpu.core_type = #tpu.core_type<tc>, window_params = [{transform_indices = @transform_0, window_bounds = array<i64: 8, 512>}, {pipeline_mode = #tpu.pipeline_mode<synchronous>, transform_indices = @transform_1, window_bounds = array<i64: 512, 160>}, {pipeline_mode = #tpu.pipeline_mode<synchronous>, transform_indices = @transform_2, window_bounds = array<i64: 1, 160>}, {pipeline_mode = #tpu.pipeline_mode<synchronous>, transform_indices = @transform_3, window_bounds = array<i64: 160, 160>}, {pipeline_mode = #tpu.pipeline_mode<synchronous>, transform_indices = @transform_4, window_bounds = array<i64: 1, 160>}, {pipeline_mode = #tpu.pipeline_mode<synchronous>, transform_indices = @transform_5, window_bounds = array<i64: 160, 128>}, {pipeline_mode = #tpu.pipeline_mode<synchronous>, transform_indices = @transform_6, window_bounds = array<i64: 1, 128>}, {pipeline_mode = #tpu.pipeline_mode<synchronous>, transform_indices = @transform_7, window_bounds = array<i64: 1, 128>}, {transform_indices = @transform_8, window_bounds = array<i64: 8, 128>}]} {
    %c0 = arith.constant 0 : index
    %c0_0 = arith.constant 0 : index
    %0 = vector.load %arg1[%c0, %c0_0] : memref<8x512xf32, #tpu.memory_space<vmem>>, vector<8x512xf32>
    %c0_1 = arith.constant 0 : index
    %c0_2 = arith.constant 0 : index
    %1 = vector.load %arg2[%c0_1, %c0_2] : memref<512x160xf32, #tpu.memory_space<vmem>>, vector<512x160xf32>
    %cst = arith.constant dense<0.000000e+00> : vector<8x160xf32>
    %2 = tpu.matmul %0, %1, %cst {dimension_numbers = #tpu.dot_dimension_numbers<[1], [0], [0], [1], [0, 0, 1, 1], [], []>} : vector<8x512xf32>, vector<512x160xf32>, vector<8x160xf32> -> vector<8x160xf32>
    %c0_3 = arith.constant 0 : index
    %c0_4 = arith.constant 0 : index
    %3 = vector.load %arg3[%c0_3, %c0_4] : memref<1x160xf32, #tpu.memory_space<vmem>>, vector<1x160xf32>
    %4 = vector.broadcast %3 : vector<1x160xf32> to vector<8x160xf32>
    %5 = arith.addf %2, %4 : vector<8x160xf32>
    %cst_5 = arith.constant 0.000000e+00 : f32
    %6 = vector.broadcast %cst_5 : f32 to vector<8x160xf32>
    %7 = arith.maximumf %5, %6 : vector<8x160xf32>
    %c0_6 = arith.constant 0 : index
    %c0_7 = arith.constant 0 : index
    %8 = vector.load %arg4[%c0_6, %c0_7] : memref<160x160xf32, #tpu.memory_space<vmem>>, vector<160x160xf32>
    %cst_8 = arith.constant dense<0.000000e+00> : vector<8x160xf32>
    %9 = tpu.matmul %7, %8, %cst_8 {dimension_numbers = #tpu.dot_dimension_numbers<[1], [0], [0], [1], [0, 0, 1, 1], [], []>} : vector<8x160xf32>, vector<160x160xf32>, vector<8x160xf32> -> vector<8x160xf32>
    %c0_9 = arith.constant 0 : index
    %c0_10 = arith.constant 0 : index
    %10 = vector.load %arg5[%c0_9, %c0_10] : memref<1x160xf32, #tpu.memory_space<vmem>>, vector<1x160xf32>
    %11 = vector.broadcast %10 : vector<1x160xf32> to vector<8x160xf32>
    %12 = arith.addf %9, %11 : vector<8x160xf32>
    %cst_11 = arith.constant 0.000000e+00 : f32
    %13 = vector.broadcast %cst_11 : f32 to vector<8x160xf32>
    %14 = arith.maximumf %12, %13 : vector<8x160xf32>
    %c0_12 = arith.constant 0 : index
    %c0_13 = arith.constant 0 : index
    %15 = vector.load %arg6[%c0_12, %c0_13] : memref<160x128xf32, #tpu.memory_space<vmem>>, vector<160x128xf32>
    %cst_14 = arith.constant dense<0.000000e+00> : vector<8x128xf32>
    %16 = tpu.matmul %14, %15, %cst_14 {dimension_numbers = #tpu.dot_dimension_numbers<[1], [0], [0], [1], [0, 0, 1, 1], [], []>} : vector<8x160xf32>, vector<160x128xf32>, vector<8x128xf32> -> vector<8x128xf32>
    %c0_15 = arith.constant 0 : index
    %c0_16 = arith.constant 0 : index
    %17 = vector.load %arg7[%c0_15, %c0_16] : memref<1x128xf32, #tpu.memory_space<vmem>>, vector<1x128xf32>
    %18 = vector.broadcast %17 : vector<1x128xf32> to vector<8x128xf32>
    %19 = arith.addf %16, %18 : vector<8x128xf32>
    %cst_17 = arith.constant -1.000000e+00 : f32
    %20 = vector.broadcast %cst_17 : f32 to vector<8x128xf32>
    %21 = arith.maximumf %19, %20 : vector<8x128xf32>
    %cst_18 = arith.constant 2.000000e+01 : f32
    %22 = vector.broadcast %cst_18 : f32 to vector<8x128xf32>
    %23 = arith.cmpf ogt, %19, %22 : vector<8x128xf32>
    %cst_19 = arith.constant 2.000000e+01 : f32
    %24 = vector.broadcast %cst_19 : f32 to vector<8x128xf32>
    %25 = arith.minimumf %19, %24 : vector<8x128xf32>
    %26 = math.exp %25 : vector<8x128xf32>
    %27 = math.log1p %26 : vector<8x128xf32>
    %28 = arith.select %23, %19, %27 : vector<8x128xi1>, vector<8x128xf32>
    %cst_20 = arith.constant 9.99999974E-5 : f32
    %29 = vector.broadcast %cst_20 : f32 to vector<8x128xf32>
    %30 = arith.addf %28, %29 : vector<8x128xf32>
    %c0_21 = arith.constant 0 : index
    %c0_22 = arith.constant 0 : index
    %31 = vector.load %arg8[%c0_21, %c0_22] : memref<1x128xf32, #tpu.memory_space<vmem>>, vector<1x128xf32>
    %32 = vector.broadcast %31 : vector<1x128xf32> to vector<8x128xf32>
    %33 = arith.mulf %21, %32 : vector<8x128xf32>
    %cst_23 = arith.constant 1.000000e+00 : f32
    %34 = vector.broadcast %cst_23 : f32 to vector<1x128xf32>
    %35 = arith.subf %34, %31 : vector<1x128xf32>
    %36 = vector.broadcast %35 : vector<1x128xf32> to vector<8x128xf32>
    %37 = arith.mulf %30, %36 : vector<8x128xf32>
    %38 = arith.addf %33, %37 : vector<8x128xf32>
    %c0_24 = arith.constant 0 : index
    %c0_25 = arith.constant 0 : index
    %39 = vector.load %arg9[%c0_24, %c0_25] : memref<8x128xf32, #tpu.memory_space<vmem>>, vector<8x128xf32>
    tpu.vector_store %arg9[%c0_24, %c0_25], %38 {strides = array<i32>} : memref<8x128xf32, #tpu.memory_space<vmem>>, vector<8x128xf32>,
    return
  }
  func.func @transform_0(%arg0: i32) -> (i32, i32) {
    %c0_i32 = arith.constant 0 : i32
    %c0_i32_0 = arith.constant 0 : i32
    return %arg0, %c0_i32 : i32, i32
  }
  func.func @transform_1(%arg0: i32) -> (i32, i32) {
    %c0_i32 = arith.constant 0 : i32
    %c0_i32_0 = arith.constant 0 : i32
    %c0_i32_1 = arith.constant 0 : i32
    return %c0_i32, %c0_i32_0 : i32, i32
  }
  func.func @transform_2(%arg0: i32) -> (i32, i32) {
    %c0_i32 = arith.constant 0 : i32
    %c0_i32_0 = arith.constant 0 : i32
    %c0_i32_1 = arith.constant 0 : i32
    return %c0_i32, %c0_i32_0 : i32, i32
  }
  func.func @transform_3(%arg0: i32) -> (i32, i32) {
    %c0_i32 = arith.constant 0 : i32
    %c0_i32_0 = arith.constant 0 : i32
    %c0_i32_1 = arith.constant 0 : i32
    return %c0_i32, %c0_i32_0 : i32, i32
  }
  func.func @transform_4(%arg0: i32) -> (i32, i32) {
    %c0_i32 = arith.constant 0 : i32
    %c0_i32_0 = arith.constant 0 : i32
    %c0_i32_1 = arith.constant 0 : i32
    return %c0_i32, %c0_i32_0 : i32, i32
  }
  func.func @transform_5(%arg0: i32) -> (i32, i32) {
    %c0_i32 = arith.constant 0 : i32
    %c0_i32_0 = arith.constant 0 : i32
    %c0_i32_1 = arith.constant 0 : i32
    return %c0_i32, %c0_i32_0 : i32, i32
  }
  func.func @transform_6(%arg0: i32) -> (i32, i32) {
    %c0_i32 = arith.constant 0 : i32
    %c0_i32_0 = arith.constant 0 : i32
    %c0_i32_1 = arith.constant 0 : i32
    return %c0_i32, %c0_i32_0 : i32, i32
  }
  func.func @transform_7(%arg0: i32) -> (i32, i32) {
    %c0_i32 = arith.constant 0 : i32
    %c0_i32_0 = arith.constant 0 : i32
    %c0_i32_1 = arith.constant 0 : i32
    return %c0_i32, %c0_i32_0 : i32, i32
  }
  func.func @transform_8(%arg0: i32) -> (i32, i32) {
    %c0_i32 = arith.constant 0 : i32
    %c0_i32_0 = arith.constant 0 : i32
    return %arg0, %c0_i32 : i32, i32
  }
}

</mosaic_0001>

<bundles_post_ra>
// kernel: tpu_custom_call.1
= control target key start
LH: loop header
LB: loop body
LE: loop exit
PB: predicated region body
PF: predicated region fallthrough
CT: control target
= control target key end

     0   :  { %s1252_s0 = inlined_call_operand.vmem [shape: f32[8,512], index: 0, kind: input, shape index: {}]   ;;  %s1253_s1 = inlined_call_operand.vmem [shape: f32[512,160], index: 1, kind: input, shape index: {}]   ;;  %s1254_s2 = inlined_call_operand.vmem [shape: f32[1,160], index: 2, kind: input, shape index: {}]   ;;  %s1255_s3 = inlined_call_operand.vmem [shape: f32[160,160], index: 3, kind: input, shape index: {}]   ;;  %s1256_s4 = inlined_call_operand.vmem [shape: f32[1,160], index: 4, kind: input, shape index: {}]   ;;  %s1257_s5 = inlined_call_operand.vmem [shape: f32[160,128], index: 5, kind: input, shape index: {}]   ;;  %s1258_s6 = inlined_call_operand.vmem [shape: f32[1,128], index: 6, kind: input, shape index: {}]   ;;  %s1259_s7 = inlined_call_operand.vmem [shape: f32[1,128], index: 7, kind: input, shape index: {}]   ;;  %s1260_s8 = inlined_call_operand.hbm [shape: f32[8,128], index: 8, kind: output, shape index: {}]  }
   0x1   :  { %v128_v0 = vld [vmem:[%s1253_s1 + $0x2f0] sm:$0xff]  ;;  %v126_v2 = vld [vmem:[%s1253_s1 + $0x2e0] sm:$0xff]  ;;  %v129_v62 = vld [vmem:[%s1253_s1 + $0x2f8] sm:$0xff] }
   0x2   :  { %v64_v1 = vld [vmem:[%s1253_s1 + $0xf0] sm:$0xff]  ;;  %208 = vmatpush.msra.mxu2 %v128_v0  ;;  %v62_v4 = vld [vmem:[%s1253_s1 + $0xe0] sm:$0xff]  ;;  %v65_v0 = vld [vmem:[%s1253_s1 + $0xf8] sm:$0xff] }
   0x3   :  { %168 = vmatpush.msra.mxu0 %v64_v1  ;;  %v160_v3 = vld [vmem:[%s1253_s1 + $0x3f0] sm:$0xff]  ;;  %v158_v7 = vld [vmem:[%s1253_s1 + $0x3e0] sm:$0xff]  ;;  %v161_v1 = vld [vmem:[%s1253_s1 + $0x3f8] sm:$0xff] }
   0x4   :  { %v96_v5 = vld [vmem:[%s1253_s1 + $0x1f0] sm:$0xff]  ;;  %228 = vmatpush.msra.mxu3 %v160_v3  ;;  %209 = vmatpush.msra.mxu2 %v126_v2  ;;  %v94_v9 = vld [vmem:[%s1253_s1 + $0x1e0] sm:$0xff]  ;;  %v127_v2 = vld [vmem:[%s1253_s1 + $0x2e8] sm:$0xff] }
   0x5   :  { %188 = vmatpush.msra.mxu1 %v96_v5  ;;  %v124_v6 = vld [vmem:[%s1253_s1 + $0x2d0] sm:$0xff]  ;;  %169 = vmatpush.msra.mxu0 %v62_v4  ;;  %v122_v11 = vld [vmem:[%s1253_s1 + $0x2c0] sm:$0xff]  ;;  %v63_v4 = vld [vmem:[%s1253_s1 + $0xe8] sm:$0xff] }
   0x6   :  { %v60_v8 = vld [vmem:[%s1253_s1 + $0xd0] sm:$0xff]  ;;  %229 = vmatpush.msra.mxu3 %v158_v7  ;;  %v58_v12 = vld [vmem:[%s1253_s1 + $0xc0] sm:$0xff]  ;;  %210 = vmatpush.msra.mxu2 %v124_v6  ;;  %v97_v5 = vld [vmem:[%s1253_s1 + $0x1f8] sm:$0xff] }
   0x7   :  { %v156_v10 = vld [vmem:[%s1253_s1 + $0x3d0] sm:$0xff]  ;;  %189 = vmatpush.msra.mxu1 %v94_v9  ;;  %170 = vmatpush.msra.mxu0 %v60_v8  ;;  %v154_v14 = vld [vmem:[%s1253_s1 + $0x3c0] sm:$0xff]  ;;  %v125_v6 = vld [vmem:[%s1253_s1 + $0x2d8] sm:$0xff] }
   0x8   :  { %v92_v13 = vld [vmem:[%s1253_s1 + $0x1d0] sm:$0xff]  ;;  %v90_v15 = vld [vmem:[%s1253_s1 + $0x1c0] sm:$0xff]  ;;  %230 = vmatpush.msra.mxu3 %v156_v10  ;;  %211 = vmatpush.msra.mxu2 %v122_v11  ;;  %v159_v7 = vld [vmem:[%s1253_s1 + $0x3e8] sm:$0xff] }
   0x9   :  { %190 = vmatpush.msra.mxu1 %v92_v13  ;;  %v120_v16 = vld [vmem:[%s1253_s1 + $0x2b0] sm:$0xff]  ;;  %171 = vmatpush.msra.mxu0 %v58_v12  ;;  %v118_v20 = vld [vmem:[%s1253_s1 + $0x2a0] sm:$0xff]  ;;  %v61_v8 = vld [vmem:[%s1253_s1 + $0xd8] sm:$0xff] }
   0xa   :  { %v56_v17 = vld [vmem:[%s1253_s1 + $0xb0] sm:$0xff]  ;;  %231 = vmatpush.msra.mxu3 %v154_v14  ;;  %v54_v21 = vld [vmem:[%s1253_s1 + $0xa0] sm:$0xff]  ;;  %212 = vmatpush.msra.mxu2 %v120_v16  ;;  %v95_v9 = vld [vmem:[%s1253_s1 + $0x1e8] sm:$0xff] }
   0xb   :  { %v152_v18 = vld [vmem:[%s1253_s1 + $0x3b0] sm:$0xff]  ;;  %191 = vmatpush.msra.mxu1 %v90_v15  ;;  %172 = vmatpush.msra.mxu0 %v56_v17  ;;  %v150_v22 = vld [vmem:[%s1253_s1 + $0x3a0] sm:$0xff]  ;;  %v123_v10 = vld [vmem:[%s1253_s1 + $0x2c8] sm:$0xff] }
   0xc   :  { %v88_v19 = vld [vmem:[%s1253_s1 + $0x1b0] sm:$0xff]  ;;  %v86_v23 = vld [vmem:[%s1253_s1 + $0x1a0] sm:$0xff]  ;;  %232 = vmatpush.msra.mxu3 %v152_v18  ;;  %213 = vmatpush.msra.mxu2 %v118_v20  ;;  %v157_v11 = vld [vmem:[%s1253_s1 + $0x3d8] sm:$0xff] }
   0xd   :  { %192 = vmatpush.msra.mxu1 %v88_v19  ;;  %v116_v24 = vld [vmem:[%s1253_s1 + $0x290] sm:$0xff]  ;;  %173 = vmatpush.msra.mxu0 %v54_v21  ;;  %v114_v28 = vld [vmem:[%s1253_s1 + $0x280] sm:$0xff]  ;;  %v59_v12 = vld [vmem:[%s1253_s1 + $0xc8] sm:$0xff] }
   0xe   :  { %v52_v25 = vld [vmem:[%s1253_s1 + $0x90] sm:$0xff]  ;;  %233 = vmatpush.msra.mxu3 %v150_v22  ;;  %v50_v29 = vld [vmem:[%s1253_s1 + $0x80] sm:$0xff]  ;;  %214 = vmatpush.msra.mxu2 %v116_v24  ;;  %v93_v13 = vld [vmem:[%s1253_s1 + $0x1d8] sm:$0xff] }
   0xf   :  { %v148_v26 = vld [vmem:[%s1253_s1 + $0x390] sm:$0xff]  ;;  %193 = vmatpush.msra.mxu1 %v86_v23  ;;  %174 = vmatpush.msra.mxu0 %v52_v25  ;;  %v146_v30 = vld [vmem:[%s1253_s1 + $0x380] sm:$0xff]  ;;  %v121_v14 = vld [vmem:[%s1253_s1 + $0x2b8] sm:$0xff] }
  0x10   :  { %v84_v27 = vld [vmem:[%s1253_s1 + $0x190] sm:$0xff]  ;;  %v82_v31 = vld [vmem:[%s1253_s1 + $0x180] sm:$0xff]  ;;  %234 = vmatpush.msra.mxu3 %v148_v26  ;;  %215 = vmatpush.msra.mxu2 %v114_v28  ;;  %v155_v15 = vld [vmem:[%s1253_s1 + $0x3c8] sm:$0xff] }
  0x11   :  { %194 = vmatpush.msra.mxu1 %v84_v27  ;;  %v112_v32 = vld [vmem:[%s1253_s1 + $0x270] sm:$0xff]  ;;  %175 = vmatpush.msra.mxu0 %v50_v29  ;;  %v110_v36 = vld [vmem:[%s1253_s1 + $0x260] sm:$0xff]  ;;  %v57_v16 = vld [vmem:[%s1253_s1 + $0xb8] sm:$0xff] }
  0x12   :  { %v48_v33 = vld [vmem:[%s1253_s1 + $0x70] sm:$0xff]  ;;  %235 = vmatpush.msra.mxu3 %v146_v30  ;;  %v46_v37 = vld [vmem:[%s1253_s1 + $0x60] sm:$0xff]  ;;  %216 = vmatpush.msra.mxu2 %v112_v32  ;;  %v91_v17 = vld [vmem:[%s1253_s1 + $0x1c8] sm:$0xff] }
  0x13   :  { %v144_v34 = vld [vmem:[%s1253_s1 + $0x370] sm:$0xff]  ;;  %195 = vmatpush.msra.mxu1 %v82_v31  ;;  %176 = vmatpush.msra.mxu0 %v48_v33  ;;  %v142_v38 = vld [vmem:[%s1253_s1 + $0x360] sm:$0xff]  ;;  %v119_v18 = vld [vmem:[%s1253_s1 + $0x2a8] sm:$0xff] }
  0x14   :  { %v80_v35 = vld [vmem:[%s1253_s1 + $0x170] sm:$0xff]  ;;  %v78_v39 = vld [vmem:[%s1253_s1 + $0x160] sm:$0xff]  ;;  %236 = vmatpush.msra.mxu3 %v144_v34  ;;  %217 = vmatpush.msra.mxu2 %v110_v36  ;;  %v153_v19 = vld [vmem:[%s1253_s1 + $0x3b8] sm:$0xff] }
  0x15   :  { %196 = vmatpush.msra.mxu1 %v80_v35  ;;  %v108_v40 = vld [vmem:[%s1253_s1 + $0x250] sm:$0xff]  ;;  %177 = vmatpush.msra.mxu0 %v46_v37  ;;  %v106_v44 = vld [vmem:[%s1253_s1 + $0x240] sm:$0xff]  ;;  %v55_v20 = vld [vmem:[%s1253_s1 + $0xa8] sm:$0xff] }
  0x16   :  { %v44_v41 = vld [vmem:[%s1253_s1 + $0x50] sm:$0xff]  ;;  %237 = vmatpush.msra.mxu3 %v142_v38  ;;  %v42_v45 = vld [vmem:[%s1253_s1 + $0x40] sm:$0xff]  ;;  %218 = vmatpush.msra.mxu2 %v108_v40  ;;  %v89_v21 = vld [vmem:[%s1253_s1 + $0x1b8] sm:$0xff] }
  0x17   :  { %v140_v42 = vld [vmem:[%s1253_s1 + $0x350] sm:$0xff]  ;;  %197 = vmatpush.msra.mxu1 %v78_v39  ;;  %178 = vmatpush.msra.mxu0 %v44_v41  ;;  %v138_v46 = vld [vmem:[%s1253_s1 + $0x340] sm:$0xff]  ;;  %v117_v22 = vld [vmem:[%s1253_s1 + $0x298] sm:$0xff] }
  0x18   :  { %v76_v43 = vld [vmem:[%s1253_s1 + $0x150] sm:$0xff]  ;;  %v74_v47 = vld [vmem:[%s1253_s1 + $0x140] sm:$0xff]  ;;  %238 = vmatpush.msra.mxu3 %v140_v42  ;;  %219 = vmatpush.msra.mxu2 %v106_v44  ;;  %v151_v23 = vld [vmem:[%s1253_s1 + $0x3a8] sm:$0xff] }
  0x19   :  { %198 = vmatpush.msra.mxu1 %v76_v43  ;;  %v104_v48 = vld [vmem:[%s1253_s1 + $0x230] sm:$0xff]  ;;  %179 = vmatpush.msra.mxu0 %v42_v45  ;;  %v102_v52 = vld [vmem:[%s1253_s1 + $0x220] sm:$0xff]  ;;  %v53_v24 = vld [vmem:[%s1253_s1 + $0x98] sm:$0xff] }
  0x1a   :  { %v40_v49 = vld [vmem:[%s1253_s1 + $0x30] sm:$0xff]  ;;  %239 = vmatpush.msra.mxu3 %v138_v46  ;;  %v38_v53 = vld [vmem:[%s1253_s1 + $0x20] sm:$0xff]  ;;  %220 = vmatpush.msra.mxu2 %v104_v48  ;;  %v87_v25 = vld [vmem:[%s1253_s1 + $0x1a8] sm:$0xff] }
  0x1b   :  { %v136_v50 = vld [vmem:[%s1253_s1 + $0x330] sm:$0xff]  ;;  %199 = vmatpush.msra.mxu1 %v74_v47  ;;  %180 = vmatpush.msra.mxu0 %v40_v49  ;;  %v134_v54 = vld [vmem:[%s1253_s1 + $0x320] sm:$0xff]  ;;  %v115_v26 = vld [vmem:[%s1253_s1 + $0x288] sm:$0xff] }
  0x1c   :  { %v72_v51 = vld [vmem:[%s1253_s1 + $0x130] sm:$0xff]  ;;  %v70_v55 = vld [vmem:[%s1253_s1 + $0x120] sm:$0xff]  ;;  %240 = vmatpush.msra.mxu3 %v136_v50  ;;  %221 = vmatpush.msra.mxu2 %v102_v52  ;;  %v149_v27 = vld [vmem:[%s1253_s1 + $0x398] sm:$0xff] }
  0x1d   :  { %200 = vmatpush.msra.mxu1 %v72_v51  ;;  %v100_v56 = vld [vmem:[%s1253_s1 + $0x210] sm:$0xff]  ;;  %181 = vmatpush.msra.mxu0 %v38_v53  ;;  %v98_v60 = vld [vmem:[%s1253_s1 + $0x200] sm:$0xff]  ;;  %v51_v28 = vld [vmem:[%s1253_s1 + $0x88] sm:$0xff] }
  0x1e   :  { %v36_v57 = vld [vmem:[%s1253_s1 + $0x10] sm:$0xff]  ;;  %241 = vmatpush.msra.mxu3 %v134_v54  ;;  %v34_v61 = vld [vmem:[%s1253_s1] sm:$0xff]  ;;  %222 = vmatpush.msra.mxu2 %v100_v56  ;;  %v85_v29 = vld [vmem:[%s1253_s1 + $0x198] sm:$0xff] }
  0x1f   :  { %v132_v58 = vld [vmem:[%s1253_s1 + $0x310] sm:$0xff]  ;;  %201 = vmatpush.msra.mxu1 %v70_v55  ;;  %182 = vmatpush.msra.mxu0 %v36_v57  ;;  %v130_v63 = vld [vmem:[%s1253_s1 + $0x300] sm:$0xff]  ;;  %v113_v30 = vld [vmem:[%s1253_s1 + $0x278] sm:$0xff] }
  0x20   :  { %v68_v59 = vld [vmem:[%s1253_s1 + $0x110] sm:$0xff]  ;;  %242 = vmatpush.msra.mxu3 %v132_v58  ;;  %223 = vmatpush.msra.mxu2 %v98_v60  ;;  %v66_v3 = vld [vmem:[%s1253_s1 + $0x100] sm:$0xff]  ;;  %v147_v31 = vld [vmem:[%s1253_s1 + $0x388] sm:$0xff] }
  0x21   :  { %202 = vmatpush.msra.mxu1 %v68_v59  ;;  %183 = vmatpush.msra.mxu0 %v34_v61  ;;  %v49_v32 = vld [vmem:[%s1253_s1 + $0x78] sm:$0xff]  ;;  %v83_v33 = vld [vmem:[%s1253_s1 + $0x188] sm:$0xff] }
  0x22   :  { %288 = vmatpush.msrb.mxu2 %v129_v62  ;;  %243 = vmatpush.msra.mxu3 %v130_v63  ;;  %v111_v34 = vld [vmem:[%s1253_s1 + $0x268] sm:$0xff]  ;;  %v145_v35 = vld [vmem:[%s1253_s1 + $0x378] sm:$0xff] }
  0x23   :  { %248 = vmatpush.msrb.mxu0 %v65_v0  ;;  %203 = vmatpush.msra.mxu1 %v66_v3  ;;  %v47_v36 = vld [vmem:[%s1253_s1 + $0x68] sm:$0xff]  ;;  %v81_v37 = vld [vmem:[%s1253_s1 + $0x178] sm:$0xff] }
  0x24   :  { %308 = vmatpush.msrb.mxu3 %v161_v1  ;;  %289 = vmatpush.msrb.mxu2 %v127_v2  ;;  %v109_v38 = vld [vmem:[%s1253_s1 + $0x258] sm:$0xff]  ;;  %v143_v39 = vld [vmem:[%s1253_s1 + $0x368] sm:$0xff] }
  0x25   :  { %249 = vmatpush.msrb.mxu0 %v63_v4  ;;  %268 = vmatpush.msrb.mxu1 %v97_v5 }
  0x26   :  { %290 = vmatpush.msrb.mxu2 %v125_v6  ;;  %309 = vmatpush.msrb.mxu3 %v159_v7 }
  0x27   :  { %250 = vmatpush.msrb.mxu0 %v61_v8  ;;  %269 = vmatpush.msrb.mxu1 %v95_v9 }
  0x28   :  { %291 = vmatpush.msrb.mxu2 %v123_v10  ;;  %310 = vmatpush.msrb.mxu3 %v157_v11 }
  0x29   :  { %251 = vmatpush.msrb.mxu0 %v59_v12  ;;  %270 = vmatpush.msrb.mxu1 %v93_v13 }
  0x2a   :  { %292 = vmatpush.msrb.mxu2 %v121_v14  ;;  %311 = vmatpush.msrb.mxu3 %v155_v15 }
  0x2b   :  { %252 = vmatpush.msrb.mxu0 %v57_v16  ;;  %271 = vmatpush.msrb.mxu1 %v91_v17 }
  0x2c   :  { %293 = vmatpush.msrb.mxu2 %v119_v18  ;;  %312 = vmatpush.msrb.mxu3 %v153_v19 }
  0x2d   :  { %253 = vmatpush.msrb.mxu0 %v55_v20  ;;  %272 = vmatpush.msrb.mxu1 %v89_v21 }
  0x2e   :  { %294 = vmatpush.msrb.mxu2 %v117_v22  ;;  %313 = vmatpush.msrb.mxu3 %v151_v23 }
  0x2f   :  { %254 = vmatpush.msrb.mxu0 %v53_v24  ;;  %273 = vmatpush.msrb.mxu1 %v87_v25 }
  0x30   :  { %295 = vmatpush.msrb.mxu2 %v115_v26  ;;  %314 = vmatpush.msrb.mxu3 %v149_v27 }
  0x31   :  { %255 = vmatpush.msrb.mxu0 %v51_v28  ;;  %274 = vmatpush.msrb.mxu1 %v85_v29 }
  0x32   :  { %296 = vmatpush.msrb.mxu2 %v113_v30  ;;  %315 = vmatpush.msrb.mxu3 %v147_v31 }
  0x33   :  { %256 = vmatpush.msrb.mxu0 %v49_v32  ;;  %275 = vmatpush.msrb.mxu1 %v83_v33 }
  0x34   :  { %13 = vsyncpa [#allocation3], 0  ;;  %297 = vmatpush.msrb.mxu2 %v111_v34  ;;  %316 = vmatpush.msrb.mxu3 %v145_v35  ;;  %v45_v40 = vld [vmem:[%s1253_s1 + $0x58] sm:$0xff]  ;;  %v79_v41 = vld [vmem:[%s1253_s1 + $0x168] sm:$0xff]  ;;  %vm376_vm0 = vcmask 261120   ;;  %s609_s29 = smov [#allocation2]  }
  0x35   :  { %257 = vmatpush.msrb.mxu0 %v47_v36  ;;  %276 = vmatpush.msrb.mxu1 %v81_v37  ;;  %v107_v42 = vld [vmem:[%s1253_s1 + $0x248] sm:$0xff]  ;;  %v141_v43 = vld [vmem:[%s1253_s1 + $0x358] sm:$0xff]  ;;  %v32_v44 = vld [vmem:[%s1252_s0 + $0x10] sm:$0xff]  ;;  %s562_s30 = sshll.u32 %s609_s29, 4  ;;  %s563_s30 = int_to_ptr.vmem [resolvable:$true] %s562_s30 }
  0x36   :  { %298 = vmatpush.msrb.mxu2 %v109_v38  ;;  %317 = vmatpush.msrb.mxu3 %v143_v39  ;;  %v43_v45 = vld [vmem:[%s1253_s1 + $0x48] sm:$0xff]  ;;  %v77_v46 = vld [vmem:[%s1253_s1 + $0x158] sm:$0xff]  ;;  %v30_v49 = vld [vmem:[%s1252_s0] sm:$0xff] }
  0x37   :  { %258 = vmatpush.msrb.mxu0 %v45_v40  ;;  %277 = vmatpush.msrb.mxu1 %v79_v41  ;;  %v105_v47 = vld [vmem:[%s1253_s1 + $0x238] sm:$0xff]  ;;  %v139_v48 = vld [vmem:[%s1253_s1 + $0x348] sm:$0xff]  ;;  %v360_v4 = vld [vmem:[%s1255_s3 + $0xf0] sm:$0xff] }
  0x38   :  { %299 = vmatpush.msrb.mxu2 %v107_v42  ;;  %318 = vmatpush.msrb.mxu3 %v141_v43  ;;  %v33_v50 = vld [vmem:[%s1252_s0 + $0x18] sm:$0xff]  ;;  %v75_v52 = vld [vmem:[%s1253_s1 + $0x148] sm:$0xff]  ;;  %v358_v6 = vld [vmem:[%s1255_s3 + $0xe0] sm:$0xff] }
  0x39   :  { %224 = vmatmul.f32.vlgmr.msra.gmra.mxu2 %v32_v44  ;;  %259 = vmatpush.msrb.mxu0 %v43_v45  ;;  %v41_v51 = vld [vmem:[%s1253_s1 + $0x38] sm:$0xff]  ;;  %v103_v53 = vld [vmem:[%s1253_s1 + $0x228] sm:$0xff]  ;;  %v356_v8 = vld [vmem:[%s1255_s3 + $0xd0] sm:$0xff] }
  0x3a   :  { %278 = vmatpush.msrb.mxu1 %v77_v46  ;;  %300 = vmatpush.msrb.mxu2 %v105_v47  ;;  %v137_v54 = vld [vmem:[%s1253_s1 + $0x338] sm:$0xff]  ;;  %v31_v55 = vld [vmem:[%s1252_s0 + $0x8] sm:$0xff]  ;;  %v354_v10 = vld [vmem:[%s1255_s3 + $0xc0] sm:$0xff] }
  0x3b   :  { %319 = vmatpush.msrb.mxu3 %v139_v48  ;;  %184 = vmatmul.f32.vlgmr.msra.gmra.mxu0 %v30_v49  ;;  %v39_v56 = vld [vmem:[%s1253_s1 + $0x28] sm:$0xff]  ;;  %v73_v57 = vld [vmem:[%s1253_s1 + $0x138] sm:$0xff]  ;;  %v352_v12 = vld [vmem:[%s1255_s3 + $0xb0] sm:$0xff] }
  0x3c   :  { %244 = vmatmul.f32.vlgmr.msra.gmra.mxu3 %v33_v50  ;;  %260 = vmatpush.msrb.mxu0 %v41_v51  ;;  %v101_v58 = vld [vmem:[%s1253_s1 + $0x218] sm:$0xff]  ;;  %v135_v59 = vld [vmem:[%s1253_s1 + $0x328] sm:$0xff]  ;;  %v350_v14 = vld [vmem:[%s1255_s3 + $0xa0] sm:$0xff] }
  0x3d   :  { %279 = vmatpush.msrb.mxu1 %v75_v52  ;;  %301 = vmatpush.msrb.mxu2 %v103_v53  ;;  %v37_v60 = vld [vmem:[%s1253_s1 + $0x18] sm:$0xff]  ;;  %v71_v61 = vld [vmem:[%s1253_s1 + $0x128] sm:$0xff]  ;;  %v348_v16 = vld [vmem:[%s1255_s3 + $0x90] sm:$0xff] }
  0x3e   :  { %320 = vmatpush.msrb.mxu3 %v137_v54  ;;  %204 = vmatmul.f32.vlgmr.msra.gmra.mxu1 %v31_v55  ;;  %v99_v62 = vld [vmem:[%s1253_s1 + $0x208] sm:$0xff]  ;;  %v133_v63 = vld [vmem:[%s1253_s1 + $0x318] sm:$0xff]  ;;  %v346_v18 = vld [vmem:[%s1255_s3 + $0x80] sm:$0xff] }
  0x3f   :  { %261 = vmatpush.msrb.mxu0 %v39_v56  ;;  %280 = vmatpush.msrb.mxu1 %v73_v57  ;;  %v35_v0 = vld [vmem:[%s1253_s1 + $0x8] sm:$0xff]  ;;  %v69_v1 = vld [vmem:[%s1253_s1 + $0x118] sm:$0xff]  ;;  %v344_v20 = vld [vmem:[%s1255_s3 + $0x70] sm:$0xff] }
  0x40   :  { %302 = vmatpush.msrb.mxu2 %v101_v58  ;;  %321 = vmatpush.msrb.mxu3 %v135_v59  ;;  %v131_v2 = vld [vmem:[%s1253_s1 + $0x308] sm:$0xff]  ;;  %v361_v5 = vld [vmem:[%s1255_s3 + $0xf8] sm:$0xff]  ;;  %v342_v22 = vld [vmem:[%s1255_s3 + $0x60] sm:$0xff] }
  0x41   :  { %262 = vmatpush.msrb.mxu0 %v37_v60  ;;  %281 = vmatpush.msrb.mxu1 %v71_v61  ;;  %v67_v3 = vld [vmem:[%s1253_s1 + $0x108] sm:$0xff]  ;;  %v357_v9 = vld [vmem:[%s1255_s3 + $0xd8] sm:$0xff]  ;;  %v340_v24 = vld [vmem:[%s1255_s3 + $0x50] sm:$0xff]  ;;  %s564_s1 = sshll.u32 %s1260_s8, 4  ;;  %s565_s1 = int_to_ptr.hbm [resolvable:$true] %s564_s1 }
  0x42   :  { %303 = vmatpush.msrb.mxu2 %v99_v62  ;;  %322 = vmatpush.msrb.mxu3 %v133_v63  ;;  %v359_v7 = vld [vmem:[%s1255_s3 + $0xe8] sm:$0xff]  ;;  %v353_v13 = vld [vmem:[%s1255_s3 + $0xb8] sm:$0xff]  ;;  %v338_v26 = vld [vmem:[%s1255_s3 + $0x40] sm:$0xff] }
  0x43   :  { %304 = vmatmul.f32.vlgmr.msrb.gmra.mxu2 %v32_v44  ;;  %263 = vmatpush.msrb.mxu0 %v35_v0  ;;  %v355_v11 = vld [vmem:[%s1255_s3 + $0xc8] sm:$0xff]  ;;  %v349_v17 = vld [vmem:[%s1255_s3 + $0x98] sm:$0xff]  ;;  %v336_v28 = vld [vmem:[%s1255_s3 + $0x30] sm:$0xff] }
  0x44   :  { %282 = vmatpush.msrb.mxu1 %v69_v1  ;;  %323 = vmatpush.msrb.mxu3 %v131_v2  ;;  %v351_v15 = vld [vmem:[%s1255_s3 + $0xa8] sm:$0xff]  ;;  %v345_v21 = vld [vmem:[%s1255_s3 + $0x78] sm:$0xff]  ;;  %v334_v30 = vld [vmem:[%s1255_s3 + $0x20] sm:$0xff] }
  0x45   :  { %264 = vmatmul.f32.vlgmr.msrb.gmra.mxu0 %v30_v49  ;;  %324 = vmatmul.f32.vlgmr.msrb.gmra.mxu3 %v33_v50  ;;  %v347_v19 = vld [vmem:[%s1255_s3 + $0x88] sm:$0xff]  ;;  %v341_v25 = vld [vmem:[%s1255_s3 + $0x58] sm:$0xff]  ;;  %v332_v32 = vld [vmem:[%s1255_s3 + $0x10] sm:$0xff] }
  0x46   :  { %283 = vmatpush.msrb.mxu1 %v67_v3  ;;  %380 = vmatpush.msra.mxu0 %v360_v4  ;;  %v343_v23 = vld [vmem:[%s1255_s3 + $0x68] sm:$0xff]  ;;  %v337_v29 = vld [vmem:[%s1255_s3 + $0x38] sm:$0xff]  ;;  %v330_v34 = vld [vmem:[%s1255_s3] sm:$0xff] }
  0x47   :  { %284 = vmatmul.f32.vlgmr.msrb.gmra.mxu1 %v31_v55  ;;  %420 = vmatpush.msra.mxu2 %v361_v5  ;;  %v339_v27 = vld [vmem:[%s1255_s3 + $0x48] sm:$0xff]  ;;  %v333_v33 = vld [vmem:[%s1255_s3 + $0x18] sm:$0xff]  ;;  %v368_v36 = vld [vmem:[%s1255_s3 + $0x130] sm:$0xff] }
  0x48   :  { %381 = vmatpush.msra.mxu0 %v358_v6  ;;  %v335_v31 = vld [vmem:[%s1255_s3 + $0x28] sm:$0xff]  ;;  %412 = vmatpush.msra.mxu3 %v368_v36  ;;  %v366_v37 = vld [vmem:[%s1255_s3 + $0x120] sm:$0xff]  ;;  %v364_v38 = vld [vmem:[%s1255_s3 + $0x110] sm:$0xff] }
  0x49   :  { %421 = vmatpush.msra.mxu2 %v359_v7  ;;  %v331_v35 = vld [vmem:[%s1255_s3 + $0x8] sm:$0xff]  ;;  %v362_v39 = vld [vmem:[%s1255_s3 + $0x100] sm:$0xff]  ;;  %v369_v40 = vld [vmem:[%s1255_s3 + $0x138] sm:$0xff] }
  0x4a   :  { %382 = vmatpush.msra.mxu0 %v356_v8  ;;  %413 = vmatpush.msra.mxu3 %v366_v37  ;;  %v367_v41 = vld [vmem:[%s1255_s3 + $0x128] sm:$0xff]  ;;  %v365_v42 = vld [vmem:[%s1255_s3 + $0x118] sm:$0xff]  ;;  %v162_v44 = vld [vmem:[%s1254_s2] sm:$0x3] }
  0x4b   :  { %422 = vmatpush.msra.mxu2 %v357_v9  ;;  %v363_v43 = vld [vmem:[%s1255_s3 + $0x108] sm:$0xff]  ;;  %v164_v45 = vperm.slane %v162_v44, 0  ;;  %v477_v46 = vld [vmem:[%s1257_s5 + $0x78] sm:$0xff]  ;;  %v476_v47 = vld [vmem:[%s1257_s5 + $0x70] sm:$0xff]  ;;  %v165_v59 = vperm.slane %v162_v44, 1 }
  0x4c   :  { %383 = vmatpush.msra.mxu0 %v354_v10  ;;  %414 = vmatpush.msra.mxu3 %v364_v38  ;;  %v475_v48 = vld [vmem:[%s1257_s5 + $0x68] sm:$0xff]  ;;  %v474_v51 = vld [vmem:[%s1257_s5 + $0x60] sm:$0xff]  ;;  %v473_v53 = vld [vmem:[%s1257_s5 + $0x58] sm:$0xff] }
  0x4d   :  { %423 = vmatpush.msra.mxu2 %v355_v11  ;;  %489 = vmatpush.msra.mxu1 %v477_v46  ;;  %v472_v56 = vld [vmem:[%s1257_s5 + $0x50] sm:$0xff]  ;;  %v471_v7 = vld [vmem:[%s1257_s5 + $0x48] sm:$0xff]  ;;  %v470_v8 = vld [vmem:[%s1257_s5 + $0x40] sm:$0xff] }
  0x4e   :  { %384 = vmatpush.msra.mxu0 %v352_v12  ;;  %415 = vmatpush.msra.mxu3 %v362_v39  ;;  %v469_v9 = vld [vmem:[%s1257_s5 + $0x38] sm:$0xff]  ;;  %v468_v10 = vld [vmem:[%s1257_s5 + $0x30] sm:$0xff]  ;;  %v467_v11 = vld [vmem:[%s1257_s5 + $0x28] sm:$0xff] }
  0x4f   :  { %424 = vmatpush.msra.mxu2 %v353_v13  ;;  %490 = vmatpush.msra.mxu1 %v476_v47  ;;  %v466_v12 = vld [vmem:[%s1257_s5 + $0x20] sm:$0xff]  ;;  %v465_v13 = vld [vmem:[%s1257_s5 + $0x18] sm:$0xff] }
  0x50   :  { %385 = vmatpush.msra.mxu0 %v350_v14  ;;  %452 = vmatpush.msrb.mxu3 %v369_v40  ;;  %v464_v14 = vld [vmem:[%s1257_s5 + $0x10] sm:$0xff]  ;;  %v545_v44 = vld [vmem:[%s1259_s7] sm:$0x1] }
  0x51   :  { %425 = vmatpush.msra.mxu2 %v351_v15  ;;  %491 = vmatpush.msra.mxu1 %v475_v48  ;;  %v463_v15 = vld [vmem:[%s1257_s5 + $0x8] sm:$0xff]  ;;  %v550_v47 = vsub.f32 1.0, %v545_v44 }
  0x52   :  { %386 = vmatpush.msra.mxu0 %v348_v16  ;;  %453 = vmatpush.msrb.mxu3 %v367_v41  ;;  %v462_v16 = vld [vmem:[%s1257_s5] sm:$0xff] }
  0x53   :  { %426 = vmatpush.msra.mxu2 %v349_v17  ;;  %492 = vmatpush.msra.mxu1 %v474_v51  ;;  %v481_v17 = vld [vmem:[%s1257_s5 + $0x98] sm:$0xff] }
  0x54   :  { %387 = vmatpush.msra.mxu0 %v346_v18  ;;  %454 = vmatpush.msrb.mxu3 %v365_v42  ;;  %v480_v18 = vld [vmem:[%s1257_s5 + $0x90] sm:$0xff] }
  0x55   :  { %427 = vmatpush.msra.mxu2 %v347_v19  ;;  %493 = vmatpush.msra.mxu1 %v473_v53  ;;  %v479_v19 = vld [vmem:[%s1257_s5 + $0x88] sm:$0xff]  ;;  %v578_v53 = vld [vmem:[%s1259_s7] ss:$0 sm:$0xff] }
  0x56   :  { %388 = vmatpush.msra.mxu0 %v344_v20  ;;  %455 = vmatpush.msrb.mxu3 %v363_v43  ;;  %v478_v20 = vld [vmem:[%s1257_s5 + $0x80] sm:$0xff] }
  0x57   :  { %428 = vmatpush.msra.mxu2 %v345_v21  ;;  %494 = vmatpush.msra.mxu1 %v472_v56  ;;  %v370_v21 = vld [vmem:[%s1256_s4] sm:$0x3] }
  0x58   :  { %389 = vmatpush.msra.mxu0 %v342_v22  ;;  %v372_v22 = vperm.slane %v370_v21, 0 }
  0x59   :  { %429 = vmatpush.msra.mxu2 %v343_v23  ;;  %495 = vmatpush.msra.mxu1 %v471_v7 }
  0x5a   :  { %390 = vmatpush.msra.mxu0 %v340_v24 }
  0x5b   :  { %430 = vmatpush.msra.mxu2 %v341_v25  ;;  %496 = vmatpush.msra.mxu1 %v470_v8 }
  0x5c   :  { %391 = vmatpush.msra.mxu0 %v338_v26 }
  0x5d   :  { %431 = vmatpush.msra.mxu2 %v339_v27  ;;  %497 = vmatpush.msra.mxu1 %v469_v9  ;;  %v373_v27 = vperm.slane %v370_v21, 1 }
  0x5e   :  { %392 = vmatpush.msra.mxu0 %v336_v28 }
  0x5f   :  { %432 = vmatpush.msra.mxu2 %v337_v29  ;;  %498 = vmatpush.msra.mxu1 %v468_v10 }
  0x60   :  { %393 = vmatpush.msra.mxu0 %v334_v30 }
  0x61   :  { %433 = vmatpush.msra.mxu2 %v335_v31  ;;  %499 = vmatpush.msra.mxu1 %v467_v11 }
  0x62   :  { %394 = vmatpush.msra.mxu0 %v332_v32 }
  0x63   :  { %434 = vmatpush.msra.mxu2 %v333_v33  ;;  %500 = vmatpush.msra.mxu1 %v466_v12 }
  0x64   :  { %395 = vmatpush.msra.mxu0 %v330_v34  ;;  %v577_v34 = vld [vmem:[%s1258_s6] ss:$0 sm:$0xff] }
  0x65   :  { %435 = vmatpush.msra.mxu2 %v331_v35  ;;  %501 = vmatpush.msra.mxu1 %v465_v13 }
  0x67   :  { %502 = vmatpush.msra.mxu1 %v464_v14 }
  0x69   :  { %503 = vmatpush.msra.mxu1 %v463_v15 }
  0x6b   :  { %504 = vmatpush.msra.mxu1 %v462_v16 }
  0xb8   :  { %v185_v49 = vpop.f32.mrf.mxu0 }
  0xb9   :  { %v186_v50 = vadd.f32 %v185_v49, %v164_v45 }
  0xbb   :  { %v205_v52 = vpop.f32.mrf.mxu1 }
  0xbc   :  { %v206_v54 = vadd.f32 %v205_v52, %v186_v50  ;;  %v225_v55 = vpop.f32.mrf.mxu2 }
  0xbe   :  { %v226_v57 = vadd.f32 %v225_v55, %v206_v54  ;;  %v552_v54 = vperm.slane %v550_v47, 0 }
  0xbf   :  { %v245_v58 = vpop.f32.mrf.mxu3 }
  0xc0   :  { %v246_v60 = vadd.f32 %v245_v58, %v226_v57 }
  0xc2   :  { %v328_v61 = vmax.f32 %v246_v60, 0.0  ;;  %v265_v62 = vpop.f32.mrf.mxu0 }
  0xc3   :  { %v266_v63 = vadd.f32 %v265_v62, %v165_v59 }
  0xc4   :  { %v285_v0 = vpop.f32.mrf.mxu1  ;;  %396 = vmatmul.f32.vlgmr.msra.gmra.mxu0 %v328_v61  ;;  %436 = vmatmul.f32.vlgmr.msra.gmra.mxu2 %v328_v61 }
  0xc5   :  { %v286_v1 = vadd.f32 %v285_v0, %v266_v63 }
  0xc6   :  { %v305_v2 = vpop.f32.mrf.mxu2 }
  0xc7   :  { %v306_v3 = vadd.f32 %v305_v2, %v286_v1 }
  0xc8   :  { %v325_v4 = vpop.f32.mrf.mxu3 }
  0xc9   :  { %v326_v5 = vadd.f32 %v325_v4, %v306_v3 }
  0xcb   :  { %v329_v6 = vmax.f32 %v326_v5, 0.0 }
  0xcd   :  { %573 = vmatmul.msk.f32.vlgmr.msra.gmra.mxu3 %vm376_vm0, %v329_v6 }
  0xce   :  { %521 = vmatpush.msra.mxu3 %v481_v17 }
  0xd0   :  { %522 = vmatpush.msra.mxu3 %v480_v18 }
  0xd2   :  { %523 = vmatpush.msra.mxu3 %v479_v19 }
  0xd4   :  { %524 = vmatpush.msra.mxu3 %v478_v20 }
  0xd5   :  { %574 = vmatmul.msk.f32.vlgmr.msrb.gmra.mxu3 %vm376_vm0, %v329_v6 }
 0x141   :  { %v397_v23 = vpop.f32.mrf.mxu0 }
 0x142   :  { %v398_v24 = vadd.f32 %v397_v23, %v372_v22 }
 0x147   :  { %v437_v29 = vpop.f32.mrf.mxu2 }
 0x148   :  { %v438_v30 = vadd.f32 %v437_v29, %v373_v27 }
 0x150   :  { %v417_v25 = vpop.f32.mrf.mxu3 }
 0x151   :  { %v418_v26 = vadd.f32 %v417_v25, %v398_v24 }
 0x153   :  { %v460_v28 = vmax.f32 %v418_v26, 0.0 }
 0x155   :  { %505 = vmatmul.f32.vlgmr.msra.gmra.mxu1 %v460_v28 }
 0x158   :  { %v457_v31 = vpop.f32.mrf.mxu3 }
 0x159   :  { %v458_v32 = vadd.f32 %v457_v31, %v438_v30 }
 0x15b   :  { %v461_v33 = vmax.f32 %v458_v32, 0.0 }
 0x15d   :  { %575 = vmatmul.msk.f32.vlgmr.msra.gmra.mxu3 %vm376_vm0, %v461_v33 }
 0x1d2   :  { %v506_v35 = vpop.f32.mrf.mxu1 }
 0x1d3   :  { %v507_v36 = vadd.f32 %v577_v34, %v506_v35 }
 0x1e0   :  { %v526_v37 = vpop.f32.mrf.mxu3 }
 0x1e1   :  { %v527_v38 = vadd.f32 %v526_v37, %v507_v36 }
 0x1e3   :  { %v531_v39 = vmin.f32 %v527_v38, 20.0  ;;  %vm530_vm2 = vcmp.gt.f32.partialorder %v527_v38, 20.0  ;;  %v529_v51 = vmax.f32 %v527_v38, -1.0 }
 0x1e5   :  { %v532_v40 = vmul.f32 1.442695, %v531_v39  ;;  %v549_v57 = vmul.f32 %v578_v53, %v529_v51 }
 0x1e7   :  { %579 = vpow2.f32 %v532_v40 }
 0x1ed   :  { %v580_v41 = vpop.eup %579 }
 0x1ee   :  { %v534_v42 = vadd.f32 1.0, %v580_v41  ;;  %v537_v43 = vmul.f32 -0.5, %v580_v41  ;;  %v540_v46 = vand.u32 2147483647, %v580_v41 }
 0x1f0   :  { %581 = vlog2.f32 %v534_v42  ;;  %v538_v45 = vadd.f32 1.0, %v537_v43  ;;  %vm541_vm1 = vcmp.lt.f32.partialorder %v540_v46, 0.0004427343 }
 0x1f2   :  { %v539_v50 = vmul.f32 %v580_v41, %v538_v45 }
 0x1f6   :  { %v582_v48 = vpop.eup %581 }
 0x1f7   :  { %v536_v49 = vmul.f32 0.6931472, %v582_v48 }
 0x1f9   :  { %v542_v52 = vsel %vm541_vm1, %v539_v50, %v536_v49 }
 0x1fa   :  { %v543_v55 = vsel %vm530_vm2, %v527_v38, %v542_v52 }
 0x1fb   :  { %v544_v56 = vadd.f32 0.0001, %v543_v55 }
 0x1fd   :  { %v554_v58 = vmul.f32 %v552_v54, %v544_v56 }
 0x1ff   :  { %v555_v59 = vadd.f32 %v554_v58, %v549_v57 }
 0x201   :  { %556 = vst [vmem:[#allocation2] sm:$0xff] %v555_v59 }
 0x202   :  { %567 = dma.vmem_to_hbm [thread:$0]  %s563_s30, 128, %s565_s1, [#allocation3]  }
 0x203   :  { %607 = dma.done.wait [#allocation3], 128  }
 0x204   :  { %608 = vsyncadd [#allocation3], 4294967168 }
 0x205   :  { %572 = vsyncpa [#allocation3], 1 }

</bundles_post_ra>
